<compile_context>
chip_gen: v7x
topology: tpu7x:2x2x1
jax: 0.10.0
libtpu: 0.0.40
codegen_flags: <defaults>
</compile_context>

<pallas_src>
import jax
import jax.numpy as jnp
import numpy as np
from jax.experimental import pallas as pl
from jax.experimental.pallas import tpu as pltpu

EPS = 1e-5
LANES = 128
# Rows (pixels) per grid step. Kept small so the toy shape exercises the
# multi-tile BN accumulation path; use 512-1024 rows for production shapes
# (HBM-roofline sweet spot on v5e/v6e), roughly half that on v7x (64 MiB VMEM).
TILE_ROWS = 128
VMEM_LIMIT = 32 * 1024 * 1024  # > v5e's 16 MiB scoped default, fits v7x.


def _round_up(x, m):
    return (x + m - 1) // m * m


# ---------------------------------------------------------------------------
# Pallas kernels
# ---------------------------------------------------------------------------
def _conv_stats_kernel(taps_ref, w_ref, sum_ref, sq_ref):
    """Pass 1: y = taps @ w (single MXU GEMM per tile); accumulate per-channel
    sum and sum-of-squares across the N grid axis (grid-resident outputs)."""

    @pl.when(pl.program_id(0) == 0)
    def _init():
        sum_ref[...] = jnp.zeros_like(sum_ref)
        sq_ref[...] = jnp.zeros_like(sq_ref)

    y = jnp.dot(taps_ref[...], w_ref[...], preferred_element_type=jnp.float32)
    sum_ref[...] += jnp.sum(y, axis=0, keepdims=True)
    sq_ref[...] += jnp.sum(y * y, axis=0, keepdims=True)


def _conv_affine_relu_kernel(taps_ref, w_ref, scale_ref, shift_ref, out_ref):
    """Pass 2 (conv1 stage): out = relu(conv(x) * scale + shift)."""
    y = jnp.dot(taps_ref[...], w_ref[...], preferred_element_type=jnp.float32)
    out_ref[...] = jnp.maximum(y * scale_ref[...] + shift_ref[...],
                               0.0).astype(out_ref.dtype)


def _conv_affine_add_relu_kernel(taps_ref, res_ref, w_ref, scale_ref,
                                 shift_ref, out_ref):
    """Pass 2 (conv2 stage): out = relu(conv(h) * scale + shift + residual)."""
    y = jnp.dot(taps_ref[...], w_ref[...], preferred_element_type=jnp.float32)
    h = y * scale_ref[...] + shift_ref[...] + res_ref[...]
    out_ref[...] = jnp.maximum(h, 0.0).astype(out_ref.dtype)


# ---------------------------------------------------------------------------
# BlockSpec helpers
# ---------------------------------------------------------------------------
def _row_spec(tn, c):
    """Row-tiled (tn, c) block over an (N, c) array."""
    return pl.BlockSpec((tn, c), lambda i: (i, 0))


def _rep_spec(r, c):
    """Full / replicated block (same block every grid step)."""
    return pl.BlockSpec((r, c), lambda i: (0, 0))


# ---------------------------------------------------------------------------
# One conv3x3 -> BN(train) [-> +residual] -> ReLU stage (two pallas_calls)
# ---------------------------------------------------------------------------
def _conv_bn_stage(taps, weight, gamma, beta, residual, *, tn):
    """taps: (N, K) bf16, weight: (K, CP) bf16, gamma/beta: (1, CP) f32,
    residual: (N, CP) f32 or None. Returns (N, CP) f32."""
    n, k = taps.shape
    cp = weight.shape[1]
    assert n % tn == 0, "toy wrapper assumes N divisible by TILE_ROWS"
    nt = n // tn

    # ---- pass 1: per-channel sum / sum-of-squares over all N rows --------
    csum, csq = pl.pallas_call(
        _conv_stats_kernel,
        out_shape=(jax.ShapeDtypeStruct((1, cp), jnp.float32),
                   jax.ShapeDtypeStruct((1, cp), jnp.float32)),
        grid=(nt,),
        in_specs=[_row_spec(tn, k), _rep_spec(k, cp)],
        out_specs=(_rep_spec(1, cp), _rep_spec(1, cp)),
        compiler_params=pltpu.CompilerParams(
            dimension_semantics=("arbitrary",),     # reduction over row tiles
            vmem_limit_bytes=VMEM_LIMIT),
    )(taps, weight)

    # Fold BN (batch mean, biased variance) + affine into per-channel
    # scale/shift -- tiny XLA glue on (1, CP) arrays (f32 throughout).
    mean = csum / n
    var = jnp.maximum(csq / n - mean * mean, 0.0)
    scale = gamma * jax.lax.rsqrt(var + EPS)
    shift = beta - mean * scale

    # ---- pass 2: recompute conv tile, apply scale/shift (+res) + ReLU ----
    common = dict(
        out_shape=jax.ShapeDtypeStruct((n, cp), jnp.float32),
        grid=(nt,),
        out_specs=_row_spec(tn, cp),
        compiler_params=pltpu.CompilerParams(
            dimension_semantics=("parallel",),      # shard tiles across TCs
            vmem_limit_bytes=VMEM_LIMIT),
    )
    if residual is None:
        return pl.pallas_call(
            _conv_affine_relu_kernel,
            in_specs=[_row_spec(tn, k), _rep_spec(k, cp),
                      _rep_spec(1, cp), _rep_spec(1, cp)],
            **common,
        )(taps, weight, scale, shift)
    return pl.pallas_call(
        _conv_affine_add_relu_kernel,
        in_specs=[_row_spec(tn, k), _row_spec(tn, cp), _rep_spec(k, cp),
                  _rep_spec(1, cp), _rep_spec(1, cp)],
        **common,
    )(taps, residual, weight, scale, shift)


# ---------------------------------------------------------------------------
# JAX glue (layout / im2col / parameter prep)
# ---------------------------------------------------------------------------
def _im2col(x_nhwc):
    """3x3 / stride-1 / pad-1 im2col: (B,H,W,C) -> (B*H*W, 9*C), tap-major."""
    b, h, w, c = x_nhwc.shape
    xp = jnp.pad(x_nhwc, ((0, 0), (1, 1), (1, 1), (0, 0)))
    cols = [xp[:, kh:kh + h, kw:kw + w, :]
            for kh in range(3) for kw in range(3)]
    return jnp.concatenate(cols, axis=-1).reshape(b * h * w, 9 * c)


def _prep_weight(w_oihw, cp):
    """PyTorch OIHW (Cout,Cin,3,3) -> (9*Cin, CP) bf16, Cout zero-padded."""
    co, ci, kh, kw = w_oihw.shape
    w = jnp.transpose(w_oihw, (2, 3, 1, 0)).reshape(kh * kw * ci, co)
    return jnp.pad(w, ((0, 0), (0, cp - co))).astype(jnp.bfloat16)


def _prep_bn_param(v, cp):
    """(C,) -> (1, CP) f32 zero-padded (padded channels get scale=shift=0)."""
    return jnp.pad(v.astype(jnp.float32), (0, cp - v.shape[0])).reshape(1, cp)


def basic_block_forward(x_nchw, params):
    """BasicBlock.forward with stride=1, downsample=None (identity residual)."""
    x = jnp.transpose(x_nchw, (0, 2, 3, 1)).astype(jnp.float32)  # NCHW -> NHWC
    b, h, w, cin = x.shape
    planes = params["w1"].shape[0]
    assert cin == planes, "identity residual requires inplanes == planes"
    n = b * h * w
    cp = _round_up(planes, LANES)  # lane-dense padded output channels

    w1 = _prep_weight(params["w1"], cp)
    w2 = _prep_weight(params["w2"], cp)
    g1 = _prep_bn_param(params["g1"], cp)
    b1 = _prep_bn_param(params["b1"], cp)
    g2 = _prep_bn_param(params["g2"], cp)
    b2 = _prep_bn_param(params["b2"], cp)

    # TODO(synk): generate the 9 conv taps inside the kernels from a haloed
    # NHWC row slab (manual make_async_copy of rows h-1..h+TH) instead of
    # materializing the (N, 9*Cin) im2col in HBM here and again for conv2 --
    # cuts conv-input HBM reads ~9x; kept as XLA glue in this version.
    taps1 = _im2col(x).astype(jnp.bfloat16)
    h1 = _conv_bn_stage(taps1, w1, g1, b1, None, tn=TILE_ROWS)     # (N, CP)

    h1_nhwc = h1[:, :planes].reshape(b, h, w, planes)
    taps2 = _im2col(h1_nhwc).astype(jnp.bfloat16)
    res = jnp.pad(x.reshape(n, cin), ((0, 0), (0, cp - cin)))      # f32
    out = _conv_bn_stage(taps2, w2, g2, b2, res, tn=TILE_ROWS)     # (N, CP)

    out = out[:, :planes].reshape(b, h, w, planes)
    return jnp.transpose(out, (0, 3, 1, 2))                        # NHWC->NCHW


# ---------------------------------------------------------------------------
# Pure-JAX f32 reference (correctness check only)
# ---------------------------------------------------------------------------
def _reference(x_nchw, params):
    def conv(hh, w):
        return jax.lax.conv_general_dilated(
            hh, w, window_strides=(1, 1), padding=((1, 1), (1, 1)),
            dimension_numbers=("NCHW", "OIHW", "NCHW"))

    def bn(hh, g, b):
        m = jnp.mean(hh, axis=(0, 2, 3), keepdims=True)
        v = jnp.mean((hh - m) ** 2, axis=(0, 2, 3), keepdims=True)
        return ((hh - m) * jax.lax.rsqrt(v + EPS) * g.reshape(1, -1, 1, 1)
                + b.reshape(1, -1, 1, 1))

    out = jax.nn.relu(bn(conv(x_nchw, params["w1"]), params["g1"], params["b1"]))
    out = bn(conv(out, params["w2"]), params["g2"], params["b2"]) + x_nchw
    return jax.nn.relu(out)


# ---------------------------------------------------------------------------
if __name__ == "__main__":
    key = jax.random.PRNGKey(0)
    k1, k2, k3, k4, k5, k6, kx = jax.random.split(key, 7)

    # BasicBlock(inplanes, planes), stride=1, downsample=None -> identity
    # residual requires inplanes == planes.
    B, inplanes, planes, H, W = 2, 8, 8, 16, 16

    params = {
        "w1": 0.1 * jax.random.normal(k1, (planes, inplanes, 3, 3), jnp.float32),
        "w2": 0.1 * jax.random.normal(k2, (planes, planes, 3, 3), jnp.float32),
        "g1": 1.0 + 0.1 * jax.random.normal(k3, (planes,), jnp.float32),
        "b1": 0.1 * jax.random.normal(k4, (planes,), jnp.float32),
        "g2": 1.0 + 0.1 * jax.random.normal(k5, (planes,), jnp.float32),
        "b2": 0.1 * jax.random.normal(k6, (planes,), jnp.float32),
    }
    x = jax.random.normal(kx, (B, inplanes, H, W), jnp.float32)  # NCHW input

    out = jax.block_until_ready(jax.jit(basic_block_forward)(x, params))
    ref = jax.block_until_ready(_reference(x, params))

    # Kernel feeds the MXU with bf16 taps/weights (f32 accumulation / BN),
    # so compare against the pure-f32 reference with a bf16-level tolerance.
    np.testing.assert_allclose(np.asarray(out), np.asarray(ref),
                               rtol=5e-2, atol=5e-2)
    print("KERNEL_OK")
</pallas_src>

<mosaic_0001>
module attributes {stable_mosaic.version = 11 : i64} {
  func.func @_conv_stats_kernel(%arg0: i32, %arg1: memref<128x72xbf16, #tpu.memory_space<vmem>>, %arg2: memref<72x128xbf16, #tpu.memory_space<vmem>>, %arg3: memref<1x128xf32, #tpu.memory_space<vmem>>, %arg4: memref<1x128xf32, #tpu.memory_space<vmem>>) attributes {dimension_semantics = [#tpu.dimension_semantics<arbitrary>], iteration_bounds = array<i64: 4>, scalar_prefetch = 0 : i64, scratch_operands = 0 : i64, tpu.core_type = #tpu.core_type<tc>, window_params = [{transform_indices = @transform_0, window_bounds = array<i64: 128, 72>}, {pipeline_mode = #tpu.pipeline_mode<synchronous>, transform_indices = @transform_1, window_bounds = array<i64: 72, 128>}, {pipeline_mode = #tpu.pipeline_mode<synchronous>, transform_indices = @transform_2, window_bounds = array<i64: 1, 128>}, {pipeline_mode = #tpu.pipeline_mode<synchronous>, transform_indices = @transform_3, window_bounds = array<i64: 1, 128>}]} {
    %c0_i32 = arith.constant 0 : i32
    %0 = arith.cmpi eq, %arg0, %c0_i32 : i32
    %1 = arith.extui %0 : i1 to i32
    %c0_i32_0 = arith.constant 0 : i32
    %2 = arith.cmpi ne, %1, %c0_i32_0 : i32
    scf.if %2 {
      %cst_14 = arith.constant 0.000000e+00 : f32
      %17 = vector.broadcast %cst_14 : f32 to vector<1x128xf32>
      %c0_15 = arith.constant 0 : index
      %c0_16 = arith.constant 0 : index
      %18 = vector.load %arg3[%c0_15, %c0_16] : memref<1x128xf32, #tpu.memory_space<vmem>>, vector<1x128xf32>
      tpu.vector_store %arg3[%c0_15, %c0_16], %17 {strides = array<i32>} : memref<1x128xf32, #tpu.memory_space<vmem>>, vector<1x128xf32>,
      %cst_17 = arith.constant 0.000000e+00 : f32
      %19 = vector.broadcast %cst_17 : f32 to vector<1x128xf32>
      %c0_18 = arith.constant 0 : index
      %c0_19 = arith.constant 0 : index
      %20 = vector.load %arg4[%c0_18, %c0_19] : memref<1x128xf32, #tpu.memory_space<vmem>>, vector<1x128xf32>
      tpu.vector_store %arg4[%c0_18, %c0_19], %19 {strides = array<i32>} : memref<1x128xf32, #tpu.memory_space<vmem>>, vector<1x128xf32>,
    } else {
    }
    %c0 = arith.constant 0 : index
    %c0_1 = arith.constant 0 : index
    %3 = vector.load %arg1[%c0, %c0_1] : memref<128x72xbf16, #tpu.memory_space<vmem>>, vector<128x72xbf16>
    %c0_2 = arith.constant 0 : index
    %c0_3 = arith.constant 0 : index
    %4 = vector.load %arg2[%c0_2, %c0_3] : memref<72x128xbf16, #tpu.memory_space<vmem>>, vector<72x128xbf16>
    %cst = arith.constant dense<0.000000e+00> : vector<128x128xf32>
    %5 = tpu.matmul %3, %4, %cst {dimension_numbers = #tpu.dot_dimension_numbers<[1], [0], [0], [1], [0, 0, 1, 1], [], []>} : vector<128x72xbf16>, vector<72x128xbf16>, vector<128x128xf32> -> vector<128x128xf32>
    %c0_4 = arith.constant 0 : index
    %c0_5 = arith.constant 0 : index
    %6 = vector.load %arg3[%c0_4, %c0_5] : memref<1x128xf32, #tpu.memory_space<vmem>>, vector<1x128xf32>
    %cst_6 = arith.constant dense<0.000000e+00> : vector<128xf32>
    %7 = vector.multi_reduction <add>, %5, %cst_6 [0] : vector<128x128xf32> to vector<128xf32>
    %8 = vector.shape_cast %7 : vector<128xf32> to vector<1x128xf32>
    %9 = arith.addf %6, %8 : vector<1x128xf32>
    %c0_7 = arith.constant 0 : index
    %c0_8 = arith.constant 0 : index
    %10 = vector.load %arg3[%c0_7, %c0_8] : memref<1x128xf32, #tpu.memory_space<vmem>>, vector<1x128xf32>
    tpu.vector_store %arg3[%c0_7, %c0_8], %9 {strides = array<i32>} : memref<1x128xf32, #tpu.memory_space<vmem>>, vector<1x128xf32>,
    %c0_9 = arith.constant 0 : index
    %c0_10 = arith.constant 0 : index
    %11 = vector.load %arg4[%c0_9, %c0_10] : memref<1x128xf32, #tpu.memory_space<vmem>>, vector<1x128xf32>
    %12 = arith.mulf %5, %5 : vector<128x128xf32>
    %cst_11 = arith.constant dense<0.000000e+00> : vector<128xf32>
    %13 = vector.multi_reduction <add>, %12, %cst_11 [0] : vector<128x128xf32> to vector<128xf32>
    %14 = vector.shape_cast %13 : vector<128xf32> to vector<1x128xf32>
    %15 = arith.addf %11, %14 : vector<1x128xf32>
    %c0_12 = arith.constant 0 : index
    %c0_13 = arith.constant 0 : index
    %16 = vector.load %arg4[%c0_12, %c0_13] : memref<1x128xf32, #tpu.memory_space<vmem>>, vector<1x128xf32>
    tpu.vector_store %arg4[%c0_12, %c0_13], %15 {strides = array<i32>} : memref<1x128xf32, #tpu.memory_space<vmem>>, vector<1x128xf32>,
    return
  }
  func.func @transform_0(%arg0: i32) -> (i32, i32) {
    %c0_i32 = arith.constant 0 : i32
    %c0_i32_0 = arith.constant 0 : i32
    return %arg0, %c0_i32 : i32, i32
  }
  func.func @transform_1(%arg0: i32) -> (i32, i32) {
    %c0_i32 = arith.constant 0 : i32
    %c0_i32_0 = arith.constant 0 : i32
    %c0_i32_1 = arith.constant 0 : i32
    return %c0_i32, %c0_i32_0 : i32, i32
  }
  func.func @transform_2(%arg0: i32) -> (i32, i32) {
    %c0_i32 = arith.constant 0 : i32
    %c0_i32_0 = arith.constant 0 : i32
    %c0_i32_1 = arith.constant 0 : i32
    return %c0_i32, %c0_i32_0 : i32, i32
  }
  func.func @transform_3(%arg0: i32) -> (i32, i32) {
    %c0_i32 = arith.constant 0 : i32
    %c0_i32_0 = arith.constant 0 : i32
    %c0_i32_1 = arith.constant 0 : i32
    return %c0_i32, %c0_i32_0 : i32, i32
  }
}

module attributes {stable_mosaic.version = 11 : i64} {
  func.func @_conv_affine_relu_kernel(%arg0: i32, %arg1: memref<128x72xbf16, #tpu.memory_space<vmem>>, %arg2: memref<72x128xbf16, #tpu.memory_space<vmem>>, %arg3: memref<1x128xf32, #tpu.memory_space<vmem>>, %arg4: memref<1x128xf32, #tpu.memory_space<vmem>>, %arg5: memref<128x128xf32, #tpu.memory_space<vmem>>) attributes {dimension_semantics = [#tpu.dimension_semantics<parallel>], iteration_bounds = array<i64: 4>, scalar_prefetch = 0 : i64, scratch_operands = 0 : i64, tpu.core_type = #tpu.core_type<tc>, window_params = [{transform_indices = @transform_0, window_bounds = array<i64: 128, 72>}, {pipeline_mode = #tpu.pipeline_mode<synchronous>, transform_indices = @transform_1, window_bounds = array<i64: 72, 128>}, {pipeline_mode = #tpu.pipeline_mode<synchronous>, transform_indices = @transform_2, window_bounds = array<i64: 1, 128>}, {pipeline_mode = #tpu.pipeline_mode<synchronous>, transform_indices = @transform_3, window_bounds = array<i64: 1, 128>}, {transform_indices = @transform_4, window_bounds = array<i64: 128, 128>}]} {
    %c0 = arith.constant 0 : index
    %c0_0 = arith.constant 0 : index
    %0 = vector.load %arg1[%c0, %c0_0] : memref<128x72xbf16, #tpu.memory_space<vmem>>, vector<128x72xbf16>
    %c0_1 = arith.constant 0 : index
    %c0_2 = arith.constant 0 : index
    %1 = vector.load %arg2[%c0_1, %c0_2] : memref<72x128xbf16, #tpu.memory_space<vmem>>, vector<72x128xbf16>
    %cst = arith.constant dense<0.000000e+00> : vector<128x128xf32>
    %2 = tpu.matmul %0, %1, %cst {dimension_numbers = #tpu.dot_dimension_numbers<[1], [0], [0], [1], [0, 0, 1, 1], [], []>} : vector<128x72xbf16>, vector<72x128xbf16>, vector<128x128xf32> -> vector<128x128xf32>
    %c0_3 = arith.constant 0 : index
    %c0_4 = arith.constant 0 : index
    %3 = vector.load %arg3[%c0_3, %c0_4] : memref<1x128xf32, #tpu.memory_space<vmem>>, vector<1x128xf32>
    %4 = vector.broadcast %3 : vector<1x128xf32> to vector<128x128xf32>
    %5 = arith.mulf %2, %4 : vector<128x128xf32>
    %c0_5 = arith.constant 0 : index
    %c0_6 = arith.constant 0 : index
    %6 = vector.load %arg4[%c0_5, %c0_6] : memref<1x128xf32, #tpu.memory_space<vmem>>, vector<1x128xf32>
    %7 = vector.broadcast %6 : vector<1x128xf32> to vector<128x128xf32>
    %8 = arith.addf %5, %7 : vector<128x128xf32>
    %cst_7 = arith.constant 0.000000e+00 : f32
    %9 = vector.broadcast %cst_7 : f32 to vector<128x128xf32>
    %10 = arith.maximumf %8, %9 : vector<128x128xf32>
    %c0_8 = arith.constant 0 : index
    %c0_9 = arith.constant 0 : index
    %11 = vector.load %arg5[%c0_8, %c0_9] : memref<128x128xf32, #tpu.memory_space<vmem>>, vector<128x128xf32>
    tpu.vector_store %arg5[%c0_8, %c0_9], %10 {strides = array<i32>} : memref<128x128xf32, #tpu.memory_space<vmem>>, vector<128x128xf32>,
    return
  }
  func.func @transform_0(%arg0: i32) -> (i32, i32) {
    %c0_i32 = arith.constant 0 : i32
    %c0_i32_0 = arith.constant 0 : i32
    return %arg0, %c0_i32 : i32, i32
  }
  func.func @transform_1(%arg0: i32) -> (i32, i32) {
    %c0_i32 = arith.constant 0 : i32
    %c0_i32_0 = arith.constant 0 : i32
    %c0_i32_1 = arith.constant 0 : i32
    return %c0_i32, %c0_i32_0 : i32, i32
  }
  func.func @transform_2(%arg0: i32) -> (i32, i32) {
    %c0_i32 = arith.constant 0 : i32
    %c0_i32_0 = arith.constant 0 : i32
    %c0_i32_1 = arith.constant 0 : i32
    return %c0_i32, %c0_i32_0 : i32, i32
  }
  func.func @transform_3(%arg0: i32) -> (i32, i32) {
    %c0_i32 = arith.constant 0 : i32
    %c0_i32_0 = arith.constant 0 : i32
    %c0_i32_1 = arith.constant 0 : i32
    return %c0_i32, %c0_i32_0 : i32, i32
  }
  func.func @transform_4(%arg0: i32) -> (i32, i32) {
    %c0_i32 = arith.constant 0 : i32
    %c0_i32_0 = arith.constant 0 : i32
    return %arg0, %c0_i32 : i32, i32
  }
}

module attributes {stable_mosaic.version = 11 : i64} {
  func.func @_conv_affine_add_relu_kernel(%arg0: i32, %arg1: memref<128x72xbf16, #tpu.memory_space<vmem>>, %arg2: memref<128x128xf32, #tpu.memory_space<vmem>>, %arg3: memref<72x128xbf16, #tpu.memory_space<vmem>>, %arg4: memref<1x128xf32, #tpu.memory_space<vmem>>, %arg5: memref<1x128xf32, #tpu.memory_space<vmem>>, %arg6: memref<128x128xf32, #tpu.memory_space<vmem>>) attributes {dimension_semantics = [#tpu.dimension_semantics<parallel>], iteration_bounds = array<i64: 4>, scalar_prefetch = 0 : i64, scratch_operands = 0 : i64, tpu.core_type = #tpu.core_type<tc>, window_params = [{transform_indices = @transform_0, window_bounds = array<i64: 128, 72>}, {transform_indices = @transform_1, window_bounds = array<i64: 128, 128>}, {pipeline_mode = #tpu.pipeline_mode<synchronous>, transform_indices = @transform_2, window_bounds = array<i64: 72, 128>}, {pipeline_mode = #tpu.pipeline_mode<synchronous>, transform_indices = @transform_3, window_bounds = array<i64: 1, 128>}, {pipeline_mode = #tpu.pipeline_mode<synchronous>, transform_indices = @transform_4, window_bounds = array<i64: 1, 128>}, {transform_indices = @transform_5, window_bounds = array<i64: 128, 128>}]} {
    %c0 = arith.constant 0 : index
    %c0_0 = arith.constant 0 : index
    %0 = vector.load %arg1[%c0, %c0_0] : memref<128x72xbf16, #tpu.memory_space<vmem>>, vector<128x72xbf16>
    %c0_1 = arith.constant 0 : index
    %c0_2 = arith.constant 0 : index
    %1 = vector.load %arg3[%c0_1, %c0_2] : memref<72x128xbf16, #tpu.memory_space<vmem>>, vector<72x128xbf16>
    %cst = arith.constant dense<0.000000e+00> : vector<128x128xf32>
    %2 = tpu.matmul %0, %1, %cst {dimension_numbers = #tpu.dot_dimension_numbers<[1], [0], [0], [1], [0, 0, 1, 1], [], []>} : vector<128x72xbf16>, vector<72x128xbf16>, vector<128x128xf32> -> vector<128x128xf32>
    %c0_3 = arith.constant 0 : index
    %c0_4 = arith.constant 0 : index
    %3 = vector.load %arg4[%c0_3, %c0_4] : memref<1x128xf32, #tpu.memory_space<vmem>>, vector<1x128xf32>
    %4 = vector.broadcast %3 : vector<1x128xf32> to vector<128x128xf32>
    %5 = arith.mulf %2, %4 : vector<128x128xf32>
    %c0_5 = arith.constant 0 : index
    %c0_6 = arith.constant 0 : index
    %6 = vector.load %arg5[%c0_5, %c0_6] : memref<1x128xf32, #tpu.memory_space<vmem>>, vector<1x128xf32>
    %7 = vector.broadcast %6 : vector<1x128xf32> to vector<128x128xf32>
    %8 = arith.addf %5, %7 : vector<128x128xf32>
    %c0_7 = arith.constant 0 : index
    %c0_8 = arith.constant 0 : index
    %9 = vector.load %arg2[%c0_7, %c0_8] : memref<128x128xf32, #tpu.memory_space<vmem>>, vector<128x128xf32>
    %10 = arith.addf %8, %9 : vector<128x128xf32>
    %cst_9 = arith.constant 0.000000e+00 : f32
    %11 = vector.broadcast %cst_9 : f32 to vector<128x128xf32>
    %12 = arith.maximumf %10, %11 : vector<128x128xf32>
    %c0_10 = arith.constant 0 : index
    %c0_11 = arith.constant 0 : index
    %13 = vector.load %arg6[%c0_10, %c0_11] : memref<128x128xf32, #tpu.memory_space<vmem>>, vector<128x128xf32>
    tpu.vector_store %arg6[%c0_10, %c0_11], %12 {strides = array<i32>} : memref<128x128xf32, #tpu.memory_space<vmem>>, vector<128x128xf32>,
    return
  }
  func.func @transform_0(%arg0: i32) -> (i32, i32) {
    %c0_i32 = arith.constant 0 : i32
    %c0_i32_0 = arith.constant 0 : i32
    return %arg0, %c0_i32 : i32, i32
  }
  func.func @transform_1(%arg0: i32) -> (i32, i32) {
    %c0_i32 = arith.constant 0 : i32
    %c0_i32_0 = arith.constant 0 : i32
    return %arg0, %c0_i32 : i32, i32
  }
  func.func @transform_2(%arg0: i32) -> (i32, i32) {
    %c0_i32 = arith.constant 0 : i32
    %c0_i32_0 = arith.constant 0 : i32
    %c0_i32_1 = arith.constant 0 : i32
    return %c0_i32, %c0_i32_0 : i32, i32
  }
  func.func @transform_3(%arg0: i32) -> (i32, i32) {
    %c0_i32 = arith.constant 0 : i32
    %c0_i32_0 = arith.constant 0 : i32
    %c0_i32_1 = arith.constant 0 : i32
    return %c0_i32, %c0_i32_0 : i32, i32
  }
  func.func @transform_4(%arg0: i32) -> (i32, i32) {
    %c0_i32 = arith.constant 0 : i32
    %c0_i32_0 = arith.constant 0 : i32
    %c0_i32_1 = arith.constant 0 : i32
    return %c0_i32, %c0_i32_0 : i32, i32
  }
  func.func @transform_5(%arg0: i32) -> (i32, i32) {
    %c0_i32 = arith.constant 0 : i32
    %c0_i32_0 = arith.constant 0 : i32
    return %arg0, %c0_i32 : i32, i32
  }
}

</mosaic_0001>

<bundles_post_ra>
// kernel: basic_block_forward.5
= control target key start
LH: loop header
LB: loop body
LE: loop exit
PB: predicated region body
PF: predicated region fallthrough
CT: control target
= control target key end

     0   :  { %s693_s15 = smov 0   ;;  %s797_s0 = inlined_call_operand.vmem [shape: bf16[512,72], index: 0, kind: input, shape index: {}]   ;;  %s798_s1 = inlined_call_operand.vmem [shape: bf16[72,128], index: 1, kind: input, shape index: {}]   ;;  %s799_s2 = inlined_call_operand.vmem [shape: f32[1,128], index: 2, kind: input, shape index: {}]   ;;  %s800_s3 = inlined_call_operand.vmem [shape: f32[1,128], index: 3, kind: input, shape index: {}]   ;;  %s801_s4 = inlined_call_operand.vmem [shape: f32[512,128], index: 4, kind: output, shape index: {}]  }
   0x1 LB: > { %s554_s16 = sadd.s32 4294967295, %s666_s15   ;;  %p558_p0 = scmp.ge.s32.totalorder %s666_s15, 1  ;;  %s666_s15 = sphi %s693_s15, %s14_s15  }
   0x2   : > { %p163_p1 = scmp.lt.s32.totalorder %s666_s15, 5 }
   0x4   : > { %p164_p2 = pnand %p558_p0, %p163_p1 }
   0x5   : > { %v647_v0 = vld [vmem:[%s798_s1] sm:$0xff] (!%p164_p2)   ;;  %v648_v1 = vld [vmem:[%s798_s1 + $0x8] sm:$0xff] (!%p164_p2)   ;;  %s559_s21 = sshll.u32 (!%p164_p2), %s554_s16, 4  ;;  %v649_v2 = vld [vmem:[%s798_s1 + $0x10] sm:$0xff] (!%p164_p2)   ;;  %vm294_vm0 = vcmask (!%p164_p2), 588800   ;;  %vm319_vm1 = vcmask (!%p164_p2), 1043456  }
   0x6   : > { %167 = sbr.rel (%p164_p2) target bundleno = 256 (0x100), region = 36  ;;  %601 = vmatprep.subr.bf16.mxu0 (!%p164_p2), %v647_v0  ;;  %627 = vmatprep.subr.bf16.mxu1 (!%p164_p2), %v647_v0  ;;  %p190_p3 = scmp.lt.s32.totalorder (!%p164_p2), %s559_s21, 63  ;;  %v650_v3 = vld [vmem:[%s798_s1 + $0x18] sm:$0xff] (!%p164_p2)   ;;  %v651_v6 = vld [vmem:[%s798_s1 + $0x20] ss:$0 sps:$4 sm:$0xff] (!%p164_p2)  }
   0x7   : > { %602 = vmatpush3.bf16.msra.mxu0 (!%p164_p2), %v647_v0  ;;  %632 = vmatpush3.bf16.msra.mxu1 (!%p164_p2), %v647_v0  ;;  %v321_v7 = vsel (!%p164_p2), %vm319_vm1, %v651_v6, 0  ;;  %v733_v14 = vld [vmem:[%s799_s2] ss:$0 sm:$0xff] (!%p164_p2) }
   0x8   : > { %603 = vmatprep.subr.bf16.mxu0 (!%p164_p2), %v648_v1  ;;  %628 = vmatprep.subr.bf16.mxu1 (!%p164_p2), %v648_v1  ;;  %v738_v16 = vld [vmem:[%s800_s3] ss:$0 sm:$0xff] (!%p164_p2) }
   0xb   : > { %604 = vmatpush3.bf16.msra.mxu0 (!%p164_p2), %v648_v1  ;;  %633 = vmatpush3.bf16.msra.mxu1 (!%p164_p2), %v648_v1 }
   0xc   : > { %605 = vmatprep.subr.bf16.mxu0 (!%p164_p2), %v649_v2  ;;  %629 = vmatprep.subr.bf16.mxu1 (!%p164_p2), %v649_v2 }
   0xd   : > { %s803_s21 = smov (!%p190_p3, %s559_s21), 63 }
   0xe   : > { %s560_s24 = sshll.u32 %s803_s21, 2  ;;  %s562_s10 = sshll.u32 %s803_s21, 3 }
   0xf   : > { %s193_s29 = scalar_lea.vmem %s797_s0, %s560_s24  ;;  %606 = vmatpush3.bf16.msra.mxu0 %v649_v2  ;;  %634 = vmatpush3.bf16.msra.mxu1 %v649_v2  ;;  %s752_s13 = scalar_lea.vmem %s801_s4, %s562_s10 }
  0x10   : > { %v652_v4 = vld [vmem:[%s193_s29] sm:$0xff]   ;;  %607 = vmatprep.subr.bf16.mxu0 %v650_v3  ;;  %630 = vmatprep.subr.bf16.mxu1 %v650_v3  ;;  %v654_v8 = vld [vmem:[%s193_s29 + $0x8] sm:$0xff]   ;;  %v656_v10 = vld [vmem:[%s193_s29 + $0x10] sm:$0xff]  }
  0x11   : > { %v653_v5 = vld [vmem:[%s193_s29 + $0x20] sm:$0xff]   ;;  %611 = vmatprep.mubr.msk.bf16.mxu0 %vm294_vm0, %v652_v4  ;;  %v655_v9 = vld [vmem:[%s193_s29 + $0x28] sm:$0xff]   ;;  %v657_v11 = vld [vmem:[%s193_s29 + $0x30] sm:$0xff]  }
  0x12   : > { %619 = vmatprep.mubr.msk.bf16.mxu1 %vm294_vm0, %v653_v5  ;;  %v658_v12 = vld [vmem:[%s193_s29 + $0x18] sm:$0xff]  }
  0x13   : > { %608 = vmatpush3.bf16.msra.mxu0 %v650_v3  ;;  %635 = vmatpush3.bf16.msra.mxu1 %v650_v3  ;;  %v659_v13 = vld [vmem:[%s193_s29 + $0x38] sm:$0xff]  }
  0x14   : > { %637 = vmatprep.subr.msk.bf16.mxu0 %vm319_vm1, %v651_v6  ;;  %638 = vmatprep.subr.msk.bf16.mxu1 %vm319_vm1, %v651_v6 }
  0x17   : > { %610 = vmatpush3.bf16.msra.mxu0 %v321_v7  ;;  %636 = vmatpush3.bf16.msra.mxu1 %v321_v7 }
  0x1a   : > { %612 = vmatmul.mubr.msk.bf16.vlgmr.msra.gmra.mrb[0].mxu0 %vm294_vm0, %v654_v8  ;;  %620 = vmatmul.mubr.msk.bf16.vlgmr.msra.gmra.mrb[0].mxu1 %vm294_vm0, %v655_v9 }
  0x1b   : > { %615 = vmatprep.mubr.msk.bf16.mxu0 %vm294_vm0, %v656_v10  ;;  %623 = vmatprep.mubr.msk.bf16.mxu1 %vm294_vm0, %v657_v11 }
  0x22   : > { %616 = vmatmul.mubr.msk.bf16.gmra.mrb[4].mxu0 %vm294_vm0, %v658_v12  ;;  %624 = vmatmul.mubr.msk.bf16.gmra.mrb[4].mxu1 %vm294_vm0, %v659_v13 }
  0xed   : > { %v613_v15 = vpop.f32.mrb[0].mxu0  ;;  %v621_v17 = vpop.f32.mrb[0].mxu1 }
  0xee   : > { %v429_v18 = vmul.f32 %v613_v15, %v733_v14  ;;  %v437_v19 = vmul.f32 %v621_v17, %v733_v14  ;;  %v357_v20 = vpop.f32.mrb[1].mxu0  ;;  %v389_v21 = vpop.f32.mrb[1].mxu1 }
  0xef   : > { %v427_v22 = vmul.f32 %v733_v14, %v357_v20  ;;  %v435_v23 = vmul.f32 %v733_v14, %v389_v21  ;;  %v614_v24 = vpop.f32.mrb[2].mxu0  ;;  %v622_v25 = vpop.f32.mrb[2].mxu1 }
  0xf0   : > { %v452_v26 = vadd.f32 %v738_v16, %v429_v18  ;;  %v460_v27 = vadd.f32 %v738_v16, %v437_v19  ;;  %v430_v28 = vmul.f32 %v614_v24, %v733_v14  ;;  %v438_v29 = vmul.f32 %v622_v25, %v733_v14  ;;  %v360_v30 = vpop.f32.mrb[3].mxu0  ;;  %v392_v31 = vpop.f32.mrb[3].mxu1 }
  0xf1   : > { %v450_v32 = vadd.f32 %v738_v16, %v427_v22  ;;  %v458_v33 = vadd.f32 %v738_v16, %v435_v23  ;;  %v428_v34 = vmul.f32 %v733_v14, %v360_v30  ;;  %v436_v35 = vmul.f32 %v733_v14, %v392_v31 }
  0xf2   : > { %v468_v36 = vmax.f32 %v452_v26, 0.0  ;;  %v476_v37 = vmax.f32 %v460_v27, 0.0  ;;  %v453_v38 = vadd.f32 %v738_v16, %v430_v28  ;;  %v461_v39 = vadd.f32 %v738_v16, %v438_v29 }
  0xf3   : > { %v466_v40 = vmax.f32 %v450_v32, 0.0  ;;  %v474_v41 = vmax.f32 %v458_v33, 0.0  ;;  %v451_v42 = vadd.f32 %v738_v16, %v428_v34  ;;  %v459_v43 = vadd.f32 %v738_v16, %v436_v35 }
  0xf4   : > { %484 = vst [vmem:[%s752_s13 + $0x10] sm:$0xff] %v468_v36  ;;  %492 = vst [vmem:[%s752_s13 + $0x50] sm:$0xff] %v476_v37  ;;  %v469_v44 = vmax.f32 %v453_v38, 0.0  ;;  %v477_v45 = vmax.f32 %v461_v39, 0.0 }
  0xf5   : > { %482 = vst [vmem:[%s752_s13] sm:$0xff] %v466_v40  ;;  %490 = vst [vmem:[%s752_s13 + $0x40] sm:$0xff] %v474_v41  ;;  %v467_v46 = vmax.f32 %v451_v42, 0.0  ;;  %v475_v47 = vmax.f32 %v459_v43, 0.0  ;;  %v617_v48 = vpop.f32.mrb[4].mxu0  ;;  %v625_v49 = vpop.f32.mrb[4].mxu1 }
  0xf6   : > { %485 = vst [vmem:[%s752_s13 + $0x18] sm:$0xff] %v469_v44  ;;  %493 = vst [vmem:[%s752_s13 + $0x58] sm:$0xff] %v477_v45  ;;  %v433_v50 = vmul.f32 %v617_v48, %v733_v14  ;;  %v441_v51 = vmul.f32 %v625_v49, %v733_v14  ;;  %v373_v52 = vpop.f32.mrb[5].mxu0  ;;  %v405_v53 = vpop.f32.mrb[5].mxu1 }
  0xf7   : > { %483 = vst [vmem:[%s752_s13 + $0x8] sm:$0xff] %v467_v46  ;;  %491 = vst [vmem:[%s752_s13 + $0x48] sm:$0xff] %v475_v47  ;;  %v431_v54 = vmul.f32 %v733_v14, %v373_v52  ;;  %v439_v55 = vmul.f32 %v733_v14, %v405_v53  ;;  %v618_v56 = vpop.f32.mrb[6].mxu0  ;;  %v626_v57 = vpop.f32.mrb[6].mxu1 }
  0xf8   : > { %v456_v58 = vadd.f32 %v738_v16, %v433_v50  ;;  %v464_v59 = vadd.f32 %v738_v16, %v441_v51  ;;  %v434_v60 = vmul.f32 %v618_v56, %v733_v14  ;;  %v442_v61 = vmul.f32 %v626_v57, %v733_v14  ;;  %v376_v62 = vpop.f32.mrb[7].mxu0  ;;  %v408_v63 = vpop.f32.mrb[7].mxu1 }
  0xf9   : > { %v454_v0 = vadd.f32 %v738_v16, %v431_v54  ;;  %v462_v1 = vadd.f32 %v738_v16, %v439_v55  ;;  %v432_v2 = vmul.f32 %v733_v14, %v376_v62  ;;  %v440_v3 = vmul.f32 %v733_v14, %v408_v63 }
  0xfa   : > { %v472_v4 = vmax.f32 %v456_v58, 0.0  ;;  %v480_v5 = vmax.f32 %v464_v59, 0.0  ;;  %v457_v6 = vadd.f32 %v738_v16, %v434_v60  ;;  %v465_v7 = vadd.f32 %v738_v16, %v442_v61 }
  0xfb   : > { %v470_v8 = vmax.f32 %v454_v0, 0.0  ;;  %v478_v9 = vmax.f32 %v462_v1, 0.0  ;;  %v455_v10 = vadd.f32 %v738_v16, %v432_v2  ;;  %v463_v11 = vadd.f32 %v738_v16, %v440_v3 }
  0xfc   : > { %488 = vst [vmem:[%s752_s13 + $0x30] sm:$0xff] %v472_v4  ;;  %496 = vst [vmem:[%s752_s13 + $0x70] sm:$0xff] %v480_v5  ;;  %v473_v12 = vmax.f32 %v457_v6, 0.0  ;;  %v481_v13 = vmax.f32 %v465_v7, 0.0 }
  0xfd   : > { %486 = vst [vmem:[%s752_s13 + $0x20] sm:$0xff] %v470_v8  ;;  %494 = vst [vmem:[%s752_s13 + $0x60] sm:$0xff] %v478_v9  ;;  %v471_v14 = vmax.f32 %v455_v10, 0.0  ;;  %v479_v15 = vmax.f32 %v463_v11, 0.0 }
  0xfe   : > { %489 = vst [vmem:[%s752_s13 + $0x38] sm:$0xff] %v473_v12  ;;  %497 = vst [vmem:[%s752_s13 + $0x78] sm:$0xff] %v481_v13 }
  0xff   : > { %487 = vst [vmem:[%s752_s13 + $0x28] sm:$0xff] %v471_v14  ;;  %495 = vst [vmem:[%s752_s13 + $0x68] sm:$0xff] %v479_v15 }
 0x100 PF: > { %s14_s15 = sadd.s32 1, %s666_s15  }
 0x101   : > { %p11_p4 = scmp.ge.s32.totalorder %s14_s15, 6  }
 0x103   :  { %13 = sbr.rel (!%p11_p4) target bundleno = 1 (0x1), region = 66 }

// kernel: basic_block_forward.4
= control target key start
LH: loop header
LB: loop body
LE: loop exit
PB: predicated region body
PF: predicated region fallthrough
CT: control target
= control target key end

     0   :  { %s611_s12 = smov 0   ;;  %s676_s0 = inlined_call_operand.vmem [shape: bf16[512,72], index: 0, kind: input, shape index: {}]   ;;  %s677_s1 = inlined_call_operand.vmem [shape: bf16[72,128], index: 1, kind: input, shape index: {}]   ;;  %s678_s2 = inlined_call_operand.vmem [shape: f32[1,128], index: 2, kind: output, shape index: {0}]   ;;  %s679_s3 = inlined_call_operand.vmem [shape: f32[1,128], index: 3, kind: output, shape index: {1}]  }
   0x1 LB: > { %s479_s13 = sadd.s32 4294967295, %s588_s12   ;;  %p482_p0 = scmp.ge.s32.totalorder %s588_s12, 1  ;;  %s588_s12 = sphi %s611_s12, %s14_s12  }
   0x2   : > { %p131_p1 = scmp.lt.s32.totalorder %s588_s12, 5 }
   0x4   : > { %p132_p2 = pnand %p482_p0, %p131_p1 }
   0x5   : > { %s483_s14 = sshll.u32 (!%p132_p2), %s479_s13, 4  ;;  %p485_p4 = scmp.ne.s32.totalorder (!%p132_p2), %s479_s13, 0 }
   0x6   : > { %135 = sbr.rel (%p132_p2) target bundleno = 303 (0x12f), region = 28  ;;  %p151_p3 = scmp.lt.s32.totalorder (!%p132_p2), %s483_s14, 63 }
   0xd   : > { %s681_s14 = smov (!%p151_p3, %s483_s14), 63  ;;  %160 = sbr.rel (%p485_p4) target bundleno = 20 (0x14), region = 32 }
   0xe   : > { %s484_s15 = sshll.u32 %s681_s14, 2  ;;  %v590_v0 = vmov (!%p485_p4), 0.0  }
   0xf   : > { %s622_s18 = scalar_lea.vmem %s676_s0, %s484_s15  ;;  %161 = vst [vmem:[%s678_s2] sm:$0x1] (!%p485_p4), %v590_v0  ;;  %162 = vst [vmem:[%s679_s3] sm:$0x1] (!%p485_p4), %v590_v0 }
  0x14 PF: > { %v569_v1 = vld [vmem:[%s677_s1] sm:$0xff]   ;;  %v570_v2 = vld [vmem:[%s677_s1 + $0x8] sm:$0xff]   ;;  %v571_v3 = vld [vmem:[%s677_s1 + $0x10] sm:$0xff]   ;;  %vm255_vm0 = vcmask 588800   ;;  %vm280_vm1 = vcmask 1043456  }
  0x15   : > { %522 = vmatprep.subr.bf16.mxu0 %v569_v1  ;;  %548 = vmatprep.subr.bf16.mxu1 %v569_v1  ;;  %v574_v4 = vld [vmem:[%s622_s18] sm:$0xff]   ;;  %v572_v5 = vld [vmem:[%s677_s1 + $0x18] sm:$0xff]   ;;  %v575_v9 = vld [vmem:[%s622_s18 + $0x8] sm:$0xff]  }
  0x16   : > { %523 = vmatpush3.bf16.msra.mxu0 %v569_v1  ;;  %553 = vmatpush3.bf16.msra.mxu1 %v569_v1  ;;  %v578_v6 = vld [vmem:[%s622_s18 + $0x20] sm:$0xff]   ;;  %v579_v10 = vld [vmem:[%s622_s18 + $0x28] sm:$0xff]   ;;  %v576_v11 = vld [vmem:[%s622_s18 + $0x10] sm:$0xff]  }
  0x17   : > { %524 = vmatprep.subr.bf16.mxu0 %v570_v2  ;;  %549 = vmatprep.subr.bf16.mxu1 %v570_v2  ;;  %v573_v7 = vld [vmem:[%s677_s1 + $0x20] ss:$0 sps:$4 sm:$0xff]   ;;  %v580_v12 = vld [vmem:[%s622_s18 + $0x30] sm:$0xff]   ;;  %v577_v13 = vld [vmem:[%s622_s18 + $0x18] sm:$0xff]  }
  0x18   : > { %532 = vmatprep.mubr.msk.bf16.mxu0 %vm255_vm0, %v574_v4  ;;  %540 = vmatprep.mubr.msk.bf16.mxu1 %vm255_vm0, %v578_v6  ;;  %v282_v8 = vsel %vm280_vm1, %v573_v7, 0  ;;  %v581_v14 = vld [vmem:[%s622_s18 + $0x38] sm:$0xff]  }
  0x1a   : > { %525 = vmatpush3.bf16.msra.mxu0 %v570_v2  ;;  %554 = vmatpush3.bf16.msra.mxu1 %v570_v2 }
  0x1b   : > { %526 = vmatprep.subr.bf16.mxu0 %v571_v3  ;;  %550 = vmatprep.subr.bf16.mxu1 %v571_v3 }
  0x1e   : > { %527 = vmatpush3.bf16.msra.mxu0 %v571_v3  ;;  %555 = vmatpush3.bf16.msra.mxu1 %v571_v3 }
  0x1f   : > { %528 = vmatprep.subr.bf16.mxu0 %v572_v5  ;;  %551 = vmatprep.subr.bf16.mxu1 %v572_v5 }
  0x22   : > { %529 = vmatpush3.bf16.msra.mxu0 %v572_v5  ;;  %556 = vmatpush3.bf16.msra.mxu1 %v572_v5 }
  0x23   : > { %558 = vmatprep.subr.msk.bf16.mxu0 %vm280_vm1, %v573_v7  ;;  %559 = vmatprep.subr.msk.bf16.mxu1 %vm280_vm1, %v573_v7 }
  0x26   : > { %531 = vmatpush3.bf16.msra.mxu0 %v282_v8  ;;  %557 = vmatpush3.bf16.msra.mxu1 %v282_v8 }
  0x29   : > { %533 = vmatmul.mubr.msk.bf16.vlgmr.msra.gmra.mrb[0].mxu0 %vm255_vm0, %v575_v9  ;;  %541 = vmatmul.mubr.msk.bf16.vlgmr.msra.gmra.mrb[0].mxu1 %vm255_vm0, %v579_v10 }
  0x2a   : > { %536 = vmatprep.mubr.msk.bf16.mxu0 %vm255_vm0, %v576_v11  ;;  %544 = vmatprep.mubr.msk.bf16.mxu1 %vm255_vm0, %v580_v12 }
  0x31   : > { %537 = vmatmul.mubr.msk.bf16.gmra.mrb[4].mxu0 %vm255_vm0, %v577_v13  ;;  %545 = vmatmul.mubr.msk.bf16.gmra.mrb[4].mxu1 %vm255_vm0, %v581_v14 }
  0xfc   : > { %v534_v15 = vpop.f32.mrb[0].mxu0  ;;  %v542_v16 = vpop.f32.mrb[0].mxu1 }
  0xfd   : > { %v318_v17 = vpop.f32.mrb[1].mxu0  ;;  %v350_v18 = vpop.f32.mrb[1].mxu1  ;;  %v408_v26 = vmul.f32 %v534_v15, %v534_v15  ;;  %v416_v58 = vmul.f32 %v542_v16, %v542_v16 }
  0xfe   : > { %v535_v19 = vpop.f32.mrb[2].mxu0  ;;  %v543_v20 = vpop.f32.mrb[2].mxu1  ;;  %v406_v23 = vmul.f32 %v318_v17, %v318_v17  ;;  %v414_v52 = vmul.f32 %v350_v18, %v350_v18 }
  0xff   : > { %v321_v21 = vpop.f32.mrb[3].mxu0  ;;  %v353_v22 = vpop.f32.mrb[3].mxu1  ;;  %v409_v29 = vmul.f32 %v535_v19, %v535_v19  ;;  %v417_v61 = vmul.f32 %v543_v20, %v543_v20 }
 0x100   : > { %v382_v24 = vadd.f32 %v321_v21, %v318_v17  ;;  %v407_v25 = vmul.f32 %v321_v21, %v321_v21  ;;  %v415_v57 = vmul.f32 %v353_v22, %v353_v22 }
 0x102   : > { %v383_v27 = vadd.f32 %v534_v15, %v382_v24  ;;  %v422_v28 = vadd.f32 %v407_v25, %v406_v23  ;;  %v405_v25 = vld [vmem:[%s679_s3] sm:$0x1] }
 0x104   : > { %v423_v30 = vadd.f32 %v422_v28, %v408_v26  ;;  %v538_v31 = vpop.f32.mrb[4].mxu0  ;;  %v384_v32 = vadd.f32 %v535_v19, %v383_v27  ;;  %v546_v33 = vpop.f32.mrb[4].mxu1 }
 0x105   : > { %v334_v34 = vpop.f32.mrb[5].mxu0  ;;  %v366_v35 = vpop.f32.mrb[5].mxu1  ;;  %v412_v46 = vmul.f32 %v538_v31, %v538_v31  ;;  %v420_v6 = vmul.f32 %v546_v33, %v546_v33 }
 0x106   : > { %v385_v36 = vadd.f32 %v384_v32, %v334_v34  ;;  %v410_v37 = vmul.f32 %v334_v34, %v334_v34  ;;  %v424_v38 = vadd.f32 %v423_v30, %v409_v29  ;;  %v539_v39 = vpop.f32.mrb[6].mxu0  ;;  %v547_v40 = vpop.f32.mrb[6].mxu1  ;;  %v418_v0 = vmul.f32 %v366_v35, %v366_v35 }
 0x107   : > { %v337_v41 = vpop.f32.mrb[7].mxu0  ;;  %v369_v42 = vpop.f32.mrb[7].mxu1  ;;  %v413_v49 = vmul.f32 %v539_v39, %v539_v39  ;;  %v421_v9 = vmul.f32 %v547_v40, %v547_v40 }
 0x108   : > { %v425_v43 = vadd.f32 %v424_v38, %v410_v37  ;;  %v386_v44 = vadd.f32 %v385_v36, %v337_v41  ;;  %v411_v45 = vmul.f32 %v337_v41, %v337_v41  ;;  %v419_v5 = vmul.f32 %v369_v42, %v369_v42 }
 0x10a   : > { %v387_v47 = vadd.f32 %v538_v31, %v386_v44  ;;  %v426_v48 = vadd.f32 %v425_v43, %v411_v45 }
 0x10c   : > { %v427_v50 = vadd.f32 %v426_v48, %v412_v46  ;;  %v388_v51 = vadd.f32 %v539_v39, %v387_v47 }
 0x10e   : > { %v389_v53 = vadd.f32 %v388_v51, %v350_v18  ;;  %v428_v54 = vadd.f32 %v427_v50, %v413_v49 }
 0x110   : > { %v429_v55 = vadd.f32 %v428_v54, %v414_v52  ;;  %v390_v56 = vadd.f32 %v389_v53, %v353_v22  ;;  %v381_v22 = vld [vmem:[%s678_s2] sm:$0x1] }
 0x112   : > { %v391_v59 = vadd.f32 %v542_v16, %v390_v56  ;;  %v430_v60 = vadd.f32 %v429_v55, %v415_v57 }
 0x114   : > { %v431_v62 = vadd.f32 %v430_v60, %v416_v58  ;;  %v392_v63 = vadd.f32 %v543_v20, %v391_v59 }
 0x116   : > { %v393_v1 = vadd.f32 %v392_v63, %v366_v35  ;;  %v432_v2 = vadd.f32 %v431_v62, %v417_v61 }
 0x118   : > { %v433_v3 = vadd.f32 %v432_v2, %v418_v0  ;;  %v394_v4 = vadd.f32 %v393_v1, %v369_v42 }
 0x11a   : > { %v395_v7 = vadd.f32 %v546_v33, %v394_v4  ;;  %v434_v8 = vadd.f32 %v433_v3, %v419_v5 }
 0x11c   : > { %v396_v10 = vadd.f32 %v547_v40, %v395_v7  ;;  %v435_v11 = vadd.f32 %v434_v8, %v420_v6 }
 0x11e   : > { %v397_v12 = vrot.slane %v396_v10, 4  ;;  %v436_v13 = vadd.f32 %v435_v11, %v421_v9 }
 0x120   : > { %v398_v14 = vadd.f32 %v397_v12, %v396_v10  ;;  %v437_v15 = vrot.slane %v436_v13, 4 }
 0x122   : > { %v399_v16 = vrot.slane %v398_v14, 2  ;;  %v438_v17 = vadd.f32 %v437_v15, %v436_v13 }
 0x124   : > { %v400_v18 = vadd.f32 %v399_v16, %v398_v14  ;;  %v439_v19 = vrot.slane %v438_v17, 2 }
 0x126   : > { %v401_v20 = vrot.slane %v400_v18, 1  ;;  %v440_v21 = vadd.f32 %v439_v19, %v438_v17 }
 0x128   : > { %v402_v23 = vadd.f32 %v401_v20, %v400_v18  ;;  %v441_v24 = vrot.slane %v440_v21, 1 }
 0x12a   : > { %v403_v26 = vadd.f32 %v402_v23, %v381_v22  ;;  %v442_v27 = vadd.f32 %v441_v24, %v440_v21 }
 0x12c   : > { %404 = vst [vmem:[%s678_s2] sm:$0x1] %v403_v26  ;;  %v443_v28 = vadd.f32 %v442_v27, %v405_v25 }
 0x12e   : > { %444 = vst [vmem:[%s679_s3] sm:$0x1] %v443_v28 }
 0x12f PF: > { %s14_s12 = sadd.s32 1, %s588_s12  }
 0x130   : > { %p11_p5 = scmp.ge.s32.totalorder %s14_s12, 6  }
 0x132   :  { %13 = sbr.rel (!%p11_p5) target bundleno = 1 (0x1), region = 66 }

// kernel: basic_block_forward.7
= control target key start
LH: loop header
LB: loop body
LE: loop exit
PB: predicated region body
PF: predicated region fallthrough
CT: control target
= control target key end

     0   :  { %s793_s18 = smov 0   ;;  %s922_s0 = inlined_call_operand.vmem [shape: bf16[512,72], index: 0, kind: input, shape index: {}]   ;;  %s923_s1 = inlined_call_operand.vmem [shape: f32[512,128], index: 1, kind: input, shape index: {}]   ;;  %s924_s2 = inlined_call_operand.vmem [shape: bf16[72,128], index: 2, kind: input, shape index: {}]   ;;  %s925_s3 = inlined_call_operand.vmem [shape: f32[1,128], index: 3, kind: input, shape index: {}]   ;;  %s926_s4 = inlined_call_operand.vmem [shape: f32[1,128], index: 4, kind: input, shape index: {}]   ;;  %s927_s5 = inlined_call_operand.vmem [shape: f32[512,128], index: 5, kind: output, shape index: {}]  }
   0x1 LB: > { %s647_s19 = sadd.s32 4294967295, %s761_s18   ;;  %p651_p0 = scmp.ge.s32.totalorder %s761_s18, 1  ;;  %s761_s18 = sphi %s793_s18, %s15_s18  }
   0x2   : > { %p199_p1 = scmp.lt.s32.totalorder %s761_s18, 5 }
   0x4   : > { %p200_p2 = pnand %p651_p0, %p199_p1 }
   0x5   : > { %v742_v0 = vld [vmem:[%s924_s2] sm:$0xff] (!%p200_p2)   ;;  %v743_v1 = vld [vmem:[%s924_s2 + $0x8] sm:$0xff] (!%p200_p2)   ;;  %s652_s24 = sshll.u32 (!%p200_p2), %s647_s19, 4  ;;  %v744_v2 = vld [vmem:[%s924_s2 + $0x10] sm:$0xff] (!%p200_p2)   ;;  %vm343_vm0 = vcmask (!%p200_p2), 588800   ;;  %vm368_vm1 = vcmask (!%p200_p2), 1043456  }
   0x6   : > { %203 = sbr.rel (%p200_p2) target bundleno = 259 (0x103), region = 40  ;;  %696 = vmatprep.subr.bf16.mxu0 (!%p200_p2), %v742_v0  ;;  %722 = vmatprep.subr.bf16.mxu1 (!%p200_p2), %v742_v0  ;;  %p233_p3 = scmp.lt.s32.totalorder (!%p200_p2), %s652_s24, 63  ;;  %v745_v3 = vld [vmem:[%s924_s2 + $0x18] sm:$0xff] (!%p200_p2)   ;;  %v746_v6 = vld [vmem:[%s924_s2 + $0x20] ss:$0 sps:$4 sm:$0xff] (!%p200_p2)  }
   0x7   : > { %697 = vmatpush3.bf16.msra.mxu0 (!%p200_p2), %v742_v0  ;;  %727 = vmatpush3.bf16.msra.mxu1 (!%p200_p2), %v742_v0  ;;  %v370_v7 = vsel (!%p200_p2), %vm368_vm1, %v746_v6, 0  ;;  %v834_v14 = vld [vmem:[%s925_s3] ss:$0 sm:$0xff] (!%p200_p2) }
   0x8   : > { %698 = vmatprep.subr.bf16.mxu0 (!%p200_p2), %v743_v1  ;;  %723 = vmatprep.subr.bf16.mxu1 (!%p200_p2), %v743_v1  ;;  %v846_v16 = vld [vmem:[%s926_s4] ss:$0 sm:$0xff] (!%p200_p2) }
   0xb   : > { %699 = vmatpush3.bf16.msra.mxu0 (!%p200_p2), %v743_v1  ;;  %728 = vmatpush3.bf16.msra.mxu1 (!%p200_p2), %v743_v1 }
   0xc   : > { %700 = vmatprep.subr.bf16.mxu0 (!%p200_p2), %v744_v2  ;;  %724 = vmatprep.subr.bf16.mxu1 (!%p200_p2), %v744_v2 }
   0xd   : > { %s929_s24 = smov (!%p233_p3, %s652_s24), 63 }
   0xe   : > { %s653_s27 = sshll.u32 %s929_s24, 2  ;;  %s655_s10 = sshll.u32 %s929_s24, 3 }
   0xf   : > { %s236_s7 = scalar_lea.vmem %s922_s0, %s653_s27  ;;  %701 = vmatpush3.bf16.msra.mxu0 %v744_v2  ;;  %729 = vmatpush3.bf16.msra.mxu1 %v744_v2  ;;  %s841_s15 = scalar_lea.vmem %s923_s1, %s655_s10 }
  0x10   : > { %v747_v4 = vld [vmem:[%s236_s7] sm:$0xff]   ;;  %702 = vmatprep.subr.bf16.mxu0 %v745_v3  ;;  %725 = vmatprep.subr.bf16.mxu1 %v745_v3  ;;  %v749_v8 = vld [vmem:[%s236_s7 + $0x8] sm:$0xff]   ;;  %v751_v10 = vld [vmem:[%s236_s7 + $0x10] sm:$0xff]   ;;  %s875_s21 = scalar_lea.vmem %s927_s5, %s655_s10 }
  0x11   : > { %v748_v5 = vld [vmem:[%s236_s7 + $0x20] sm:$0xff]   ;;  %706 = vmatprep.mubr.msk.bf16.mxu0 %vm343_vm0, %v747_v4  ;;  %v750_v9 = vld [vmem:[%s236_s7 + $0x28] sm:$0xff]   ;;  %v752_v11 = vld [vmem:[%s236_s7 + $0x30] sm:$0xff]  }
  0x12   : > { %714 = vmatprep.mubr.msk.bf16.mxu1 %vm343_vm0, %v748_v5  ;;  %v753_v12 = vld [vmem:[%s236_s7 + $0x18] sm:$0xff]   ;;  %v517_v22 = vld [vmem:[%s841_s15 + $0x10] sm:$0xff]  ;;  %v515_v30 = vld [vmem:[%s841_s15] sm:$0xff] }
  0x13   : > { %703 = vmatpush3.bf16.msra.mxu0 %v745_v3  ;;  %730 = vmatpush3.bf16.msra.mxu1 %v745_v3  ;;  %v754_v13 = vld [vmem:[%s236_s7 + $0x38] sm:$0xff]   ;;  %v525_v23 = vld [vmem:[%s841_s15 + $0x50] sm:$0xff]  ;;  %v523_v31 = vld [vmem:[%s841_s15 + $0x40] sm:$0xff] }
  0x14   : > { %732 = vmatprep.subr.msk.bf16.mxu0 %vm368_vm1, %v746_v6  ;;  %733 = vmatprep.subr.msk.bf16.mxu1 %vm368_vm1, %v746_v6  ;;  %v518_v38 = vld [vmem:[%s841_s15 + $0x18] sm:$0xff]  ;;  %v516_v46 = vld [vmem:[%s841_s15 + $0x8] sm:$0xff]  ;;  %v521_v6 = vld [vmem:[%s841_s15 + $0x30] sm:$0xff] }
  0x15   : > { %v526_v39 = vld [vmem:[%s841_s15 + $0x58] sm:$0xff]  ;;  %v524_v47 = vld [vmem:[%s841_s15 + $0x48] sm:$0xff] }
  0x17   : > { %705 = vmatpush3.bf16.msra.mxu0 %v370_v7  ;;  %731 = vmatpush3.bf16.msra.mxu1 %v370_v7  ;;  %v529_v7 = vld [vmem:[%s841_s15 + $0x70] sm:$0xff] }
  0x1a   : > { %707 = vmatmul.mubr.msk.bf16.vlgmr.msra.gmra.mrb[0].mxu0 %vm343_vm0, %v749_v8  ;;  %715 = vmatmul.mubr.msk.bf16.vlgmr.msra.gmra.mrb[0].mxu1 %vm343_vm0, %v750_v9 }
  0x1b   : > { %710 = vmatprep.mubr.msk.bf16.mxu0 %vm343_vm0, %v751_v10  ;;  %718 = vmatprep.mubr.msk.bf16.mxu1 %vm343_vm0, %v752_v11 }
  0x22   : > { %711 = vmatmul.mubr.msk.bf16.gmra.mrb[4].mxu0 %vm343_vm0, %v753_v12  ;;  %719 = vmatmul.mubr.msk.bf16.gmra.mrb[4].mxu1 %vm343_vm0, %v754_v13 }
  0xed   : > { %v708_v15 = vpop.f32.mrb[0].mxu0  ;;  %v716_v17 = vpop.f32.mrb[0].mxu1 }
  0xee   : > { %v478_v18 = vmul.f32 %v708_v15, %v834_v14  ;;  %v486_v19 = vmul.f32 %v716_v17, %v834_v14  ;;  %v406_v20 = vpop.f32.mrb[1].mxu0  ;;  %v438_v21 = vpop.f32.mrb[1].mxu1  ;;  %v519_v15 = vld [vmem:[%s841_s15 + $0x20] sm:$0xff] }
  0xef   : > { %v476_v24 = vmul.f32 %v834_v14, %v406_v20  ;;  %v484_v25 = vmul.f32 %v834_v14, %v438_v21  ;;  %v709_v26 = vpop.f32.mrb[2].mxu0  ;;  %v717_v27 = vpop.f32.mrb[2].mxu1  ;;  %v527_v17 = vld [vmem:[%s841_s15 + $0x60] sm:$0xff] }
  0xf0   : > { %v501_v28 = vadd.f32 %v846_v16, %v478_v18  ;;  %v509_v29 = vadd.f32 %v846_v16, %v486_v19  ;;  %v479_v32 = vmul.f32 %v709_v26, %v834_v14  ;;  %v487_v33 = vmul.f32 %v717_v27, %v834_v14  ;;  %v409_v34 = vpop.f32.mrb[3].mxu0  ;;  %v441_v35 = vpop.f32.mrb[3].mxu1 }
  0xf1   : > { %v499_v36 = vadd.f32 %v846_v16, %v476_v24  ;;  %v507_v37 = vadd.f32 %v846_v16, %v484_v25  ;;  %v477_v40 = vmul.f32 %v834_v14, %v409_v34  ;;  %v485_v41 = vmul.f32 %v834_v14, %v441_v35  ;;  %v522_v24 = vld [vmem:[%s841_s15 + $0x38] sm:$0xff] }
  0xf2   : > { %v533_v42 = vadd.f32 %v517_v22, %v501_v28  ;;  %v541_v43 = vadd.f32 %v525_v23, %v509_v29  ;;  %v502_v44 = vadd.f32 %v846_v16, %v479_v32  ;;  %v510_v45 = vadd.f32 %v846_v16, %v487_v33  ;;  %v530_v25 = vld [vmem:[%s841_s15 + $0x78] sm:$0xff]  ;;  %v520_v32 = vld [vmem:[%s841_s15 + $0x28] sm:$0xff] }
  0xf3   : > { %v531_v48 = vadd.f32 %v515_v30, %v499_v36  ;;  %v539_v49 = vadd.f32 %v523_v31, %v507_v37  ;;  %v500_v50 = vadd.f32 %v846_v16, %v477_v40  ;;  %v508_v51 = vadd.f32 %v846_v16, %v485_v41  ;;  %v528_v33 = vld [vmem:[%s841_s15 + $0x68] sm:$0xff] }
  0xf4   : > { %v549_v52 = vmax.f32 %v533_v42, 0.0  ;;  %v557_v53 = vmax.f32 %v541_v43, 0.0  ;;  %v534_v54 = vadd.f32 %v518_v38, %v502_v44  ;;  %v542_v55 = vadd.f32 %v526_v39, %v510_v45 }
  0xf5   : > { %v547_v56 = vmax.f32 %v531_v48, 0.0  ;;  %v555_v57 = vmax.f32 %v539_v49, 0.0  ;;  %v532_v58 = vadd.f32 %v516_v46, %v500_v50  ;;  %v540_v59 = vadd.f32 %v524_v47, %v508_v51  ;;  %v712_v60 = vpop.f32.mrb[4].mxu0  ;;  %v720_v61 = vpop.f32.mrb[4].mxu1 }
  0xf6   : > { %565 = vst [vmem:[%s875_s21 + $0x10] sm:$0xff] %v549_v52  ;;  %573 = vst [vmem:[%s875_s21 + $0x50] sm:$0xff] %v557_v53  ;;  %v550_v62 = vmax.f32 %v534_v54, 0.0  ;;  %v558_v63 = vmax.f32 %v542_v55, 0.0  ;;  %v482_v0 = vmul.f32 %v712_v60, %v834_v14  ;;  %v490_v1 = vmul.f32 %v720_v61, %v834_v14  ;;  %v422_v2 = vpop.f32.mrb[5].mxu0  ;;  %v454_v3 = vpop.f32.mrb[5].mxu1 }
  0xf7   : > { %563 = vst [vmem:[%s875_s21] sm:$0xff] %v547_v56  ;;  %571 = vst [vmem:[%s875_s21 + $0x40] sm:$0xff] %v555_v57  ;;  %v548_v4 = vmax.f32 %v532_v58, 0.0  ;;  %v556_v5 = vmax.f32 %v540_v59, 0.0  ;;  %v480_v8 = vmul.f32 %v834_v14, %v422_v2  ;;  %v488_v9 = vmul.f32 %v834_v14, %v454_v3  ;;  %v713_v10 = vpop.f32.mrb[6].mxu0  ;;  %v721_v11 = vpop.f32.mrb[6].mxu1 }
  0xf8   : > { %566 = vst [vmem:[%s875_s21 + $0x18] sm:$0xff] %v550_v62  ;;  %574 = vst [vmem:[%s875_s21 + $0x58] sm:$0xff] %v558_v63  ;;  %v505_v12 = vadd.f32 %v846_v16, %v482_v0  ;;  %v513_v13 = vadd.f32 %v846_v16, %v490_v1  ;;  %v483_v18 = vmul.f32 %v713_v10, %v834_v14  ;;  %v425_v20 = vpop.f32.mrb[7].mxu0  ;;  %v457_v21 = vpop.f32.mrb[7].mxu1 }
  0xf9   : > { %v491_v19 = vmul.f32 %v721_v11, %v834_v14  ;;  %564 = vst [vmem:[%s875_s21 + $0x8] sm:$0xff] %v548_v4  ;;  %572 = vst [vmem:[%s875_s21 + $0x48] sm:$0xff] %v556_v5  ;;  %v503_v22 = vadd.f32 %v846_v16, %v480_v8  ;;  %v511_v23 = vadd.f32 %v846_v16, %v488_v9 }
  0xfa   : > { %v481_v26 = vmul.f32 %v834_v14, %v425_v20  ;;  %v489_v27 = vmul.f32 %v834_v14, %v457_v21  ;;  %v537_v28 = vadd.f32 %v521_v6, %v505_v12  ;;  %v545_v29 = vadd.f32 %v529_v7, %v513_v13 }
  0xfb   : > { %v506_v30 = vadd.f32 %v846_v16, %v483_v18  ;;  %v514_v31 = vadd.f32 %v846_v16, %v491_v19  ;;  %v535_v34 = vadd.f32 %v519_v15, %v503_v22  ;;  %v543_v35 = vadd.f32 %v527_v17, %v511_v23 }
  0xfc   : > { %v504_v36 = vadd.f32 %v846_v16, %v481_v26  ;;  %v512_v37 = vadd.f32 %v846_v16, %v489_v27  ;;  %v553_v38 = vmax.f32 %v537_v28, 0.0  ;;  %v561_v14 = vmax.f32 %v545_v29, 0.0 }
  0xfd   : > { %v538_v39 = vadd.f32 %v522_v24, %v506_v30  ;;  %v546_v40 = vadd.f32 %v530_v25, %v514_v31  ;;  %v551_v41 = vmax.f32 %v535_v34, 0.0  ;;  %v559_v42 = vmax.f32 %v543_v35, 0.0 }
  0xfe   : > { %v536_v43 = vadd.f32 %v520_v32, %v504_v36  ;;  %v544_v44 = vadd.f32 %v528_v33, %v512_v37  ;;  %569 = vst [vmem:[%s875_s21 + $0x30] sm:$0xff] %v553_v38  ;;  %577 = vst [vmem:[%s875_s21 + $0x70] sm:$0xff] %v561_v14 }
  0xff   : > { %v554_v45 = vmax.f32 %v538_v39, 0.0  ;;  %v562_v46 = vmax.f32 %v546_v40, 0.0  ;;  %567 = vst [vmem:[%s875_s21 + $0x20] sm:$0xff] %v551_v41  ;;  %575 = vst [vmem:[%s875_s21 + $0x60] sm:$0xff] %v559_v42 }
 0x100   : > { %v552_v47 = vmax.f32 %v536_v43, 0.0  ;;  %v560_v16 = vmax.f32 %v544_v44, 0.0 }
 0x101   : > { %570 = vst [vmem:[%s875_s21 + $0x38] sm:$0xff] %v554_v45  ;;  %578 = vst [vmem:[%s875_s21 + $0x78] sm:$0xff] %v562_v46 }
 0x102   : > { %568 = vst [vmem:[%s875_s21 + $0x28] sm:$0xff] %v552_v47  ;;  %576 = vst [vmem:[%s875_s21 + $0x68] sm:$0xff] %v560_v16 }
 0x103 PF: > { %s15_s18 = sadd.s32 1, %s761_s18  }
 0x104   : > { %p12_p4 = scmp.ge.s32.totalorder %s15_s18, 6  }
 0x106   :  { %14 = sbr.rel (!%p12_p4) target bundleno = 1 (0x1), region = 73 }

</bundles_post_ra>
